<compile_context>
chip_gen: v5e
topology: v5e:2x2
jax: 0.10.0
libtpu: 0.0.40
codegen_flags: <defaults>
</compile_context>

<pallas_src>
import functools

import jax
import jax.numpy as jnp
from jax.experimental import pallas as pl
from jax.experimental.pallas import tpu as pltpu


HIDDEN = 32          # hidden_dims = [32, 32]
MAX_TL = 32768       # max interface points per grid step (lane tile)
_PCOLS = 6 + HIDDEN  # packed-parameter columns: w1L, w1R, b1, W2^T(H), b2, w3, b3


def _mlp_flux_kernel(x_ref, p_ref, out_ref):
    H = HIDDEN
    x = x_ref[...]                          # (2, TL)
    P = p_ref[...]                          # (H, 6+H), resident across grid

    uL = x[0:1, :]                          # (1, TL)
    uR = x[1:2, :]                          # (1, TL)

    w1L = P[:, 0:1]                         # (H, 1)
    w1R = P[:, 1:2]                         # (H, 1)
    b1  = P[:, 2:3]                         # (H, 1)
    w2t = P[:, 3:3 + H]                     # (H, H)  == W2^T
    b2  = P[:, 3 + H:4 + H]                 # (H, 1)
    w3  = P[:, 4 + H:5 + H]                 # (H, 1)
    b3  = P[0:1, 5 + H:6 + H]               # (1, 1)

    # Layer 1 (in=2): broadcast FMA on the VPU -- K=2 is too small for the MXU.
    h = jnp.maximum(w1L * uL + w1R * uR + b1, 0.0)                      # (H, TL)

    # Layer 2: (H, H) @ (H, TL) on the MXU, fully lane-dense output.
    h = jnp.dot(w2t, h, preferred_element_type=jnp.float32) + b2        # (H, TL)
    h = jnp.maximum(h, 0.0)

    # Layer 3 (out=1): VPU multiply + sublane-sum reduction (keeps lanes dense,
    # avoids a width-1 MXU matmul).
    out = jnp.sum(w3 * h, axis=0, keepdims=True) + b3                   # (1, TL)
    out_ref[...] = out.astype(out_ref.dtype)


def _pack_params(params):
    """Pack (w1,b1,w2,b2,w3,b3) -- stored (in,out) -- into one (H, 6+H) block."""
    w1, b1, w2, b2, w3, b3 = params
    H = HIDDEN
    return jnp.concatenate(
        [
            w1[0, :][:, None],               # weights multiplying uL   (H,1)
            w1[1, :][:, None],               # weights multiplying uR   (H,1)
            b1.reshape(H, 1),                # b1                        (H,1)
            w2.T,                            # W2^T                      (H,H)
            b2.reshape(H, 1),                # b2                        (H,1)
            w3.reshape(H, 1),                # w3                        (H,1)
            jnp.full((H, 1), b3.reshape(())),  # b3 (replicated)         (H,1)
        ],
        axis=1,
    ).astype(jnp.float32)                    # (H, 6+H)


@jax.jit
def mlp_flux_2_value(uL, uR, params):
    """uL, uR: (B, N) float32. Returns flux: (B, N) float32."""
    B, N = uL.shape
    M = B * N

    # Lane tile: big blocks (fewer grid steps, lane-dense DMAs); for small
    # problems just round up to one 128-lane-aligned block.
    if M <= MAX_TL:
        TL = max(((M + 127) // 128) * 128, 128)
    else:
        TL = MAX_TL
    M_pad = ((M + TL - 1) // TL) * TL
    grid = (M_pad // TL,)

    # Single stack + pad (no zero-init/scatter copies).
    x = jnp.stack([uL.reshape(-1), uR.reshape(-1)], axis=0).astype(jnp.float32)
    if M_pad != M:
        x = jnp.pad(x, ((0, 0), (0, M_pad - M)))

    P = _pack_params(params)

    flux_row = pl.pallas_call(
        _mlp_flux_kernel,
        out_shape=jax.ShapeDtypeStruct((1, M_pad), jnp.float32),
        grid_spec=pltpu.PrefetchScalarGridSpec(
            num_scalar_prefetch=0,
            grid=grid,
            in_specs=[
                pl.BlockSpec((2, TL), lambda i: (0, i)),          # x (lane-tiled)
                pl.BlockSpec((HIDDEN, _PCOLS), lambda i: (0, 0)), # packed params
            ],
            out_specs=pl.BlockSpec((1, TL), lambda i: (0, i)),
        ),
        compiler_params=pltpu.CompilerParams(
            dimension_semantics=("parallel",),     # shards grid steps across TCs (v7x)
            vmem_limit_bytes=32 * 1024 * 1024,     # explicit: safe on v7x's 64 MiB VMEM
        ),
    )(x, P)

    return flux_row[0, :M].reshape(B, N)


def init_params(key, hidden_dims=(HIDDEN, HIDDEN)):
    """Xavier-uniform weights (stored as (in, out)), zero biases — matches PyTorch init."""
    dims = [2] + list(hidden_dims) + [1]
    params = []
    for i in range(len(dims) - 1):
        fan_in, fan_out = dims[i], dims[i + 1]
        key, sub = jax.random.split(key)
        bound = (6.0 / (fan_in + fan_out)) ** 0.5
        w = jax.random.uniform(sub, (fan_in, fan_out), jnp.float32,
                               minval=-bound, maxval=bound)
        b = jnp.zeros((1, fan_out), jnp.float32)
        params += [w, b]
    return tuple(params)


def _reference(uL, uR, params):
    """Pure-JAX reference of the PyTorch forward."""
    w1, b1, w2, b2, w3, b3 = params
    B, N = uL.shape
    x = jnp.stack([uL, uR], axis=-1).reshape(B * N, 2)
    x = jnp.maximum(x @ w1 + b1, 0.0)
    x = jnp.maximum(x @ w2 + b2, 0.0)
    x = x @ w3 + b3
    return x.reshape(B, N)


# TODO(synk): only the forward pass is implemented; training loops, plotting,
# and save/load from the PyTorch module are host-side utilities with no Pallas
# equivalent.

if __name__ == "__main__":
    key = jax.random.PRNGKey(0)
    kp, ka, kb = jax.random.split(key, 3)

    params = init_params(kp)

    B, N = 2, 16
    uL = jax.random.uniform(ka, (B, N), jnp.float32, minval=-2.0, maxval=2.0)
    uR = jax.random.uniform(kb, (B, N), jnp.float32, minval=-2.0, maxval=2.0)

    flux = mlp_flux_2_value(uL, uR, params)
    jax.block_until_ready(flux)

    ref = _reference(uL, uR, params)
    assert flux.shape == (B, N)
    assert jnp.allclose(flux, ref, atol=1e-5, rtol=1e-5), \
        f"max abs err {jnp.max(jnp.abs(flux - ref))}"

    print("KERNEL_OK")
</pallas_src>

<mosaic_0001>
module attributes {stable_mosaic.version = 11 : i64} {
  func.func @_mlp_flux_kernel(%arg0: i32, %arg1: memref<2x128xf32, #tpu.memory_space<vmem>>, %arg2: memref<32x38xf32, #tpu.memory_space<vmem>>, %arg3: memref<1x128xf32, #tpu.memory_space<vmem>>) attributes {dimension_semantics = [#tpu.dimension_semantics<parallel>], iteration_bounds = array<i64: 1>, scalar_prefetch = 0 : i64, scratch_operands = 0 : i64, tpu.core_type = #tpu.core_type<tc>, window_params = [{transform_indices = @transform_0, window_bounds = array<i64: 2, 128>}, {pipeline_mode = #tpu.pipeline_mode<synchronous>, transform_indices = @transform_1, window_bounds = array<i64: 32, 38>}, {transform_indices = @transform_2, window_bounds = array<i64: 1, 128>}]} {
    %c0 = arith.constant 0 : index
    %c0_0 = arith.constant 0 : index
    %0 = vector.load %arg1[%c0, %c0_0] : memref<2x128xf32, #tpu.memory_space<vmem>>, vector<2x128xf32>
    %c0_1 = arith.constant 0 : index
    %c0_2 = arith.constant 0 : index
    %1 = vector.load %arg2[%c0_1, %c0_2] : memref<32x38xf32, #tpu.memory_space<vmem>>, vector<32x38xf32>
    %2 = vector.extract_strided_slice %0 {offsets = [0, 0], sizes = [1, 128], strides = [1, 1]} : vector<2x128xf32> to vector<1x128xf32>
    %3 = vector.extract_strided_slice %0 {offsets = [1, 0], sizes = [1, 128], strides = [1, 1]} : vector<2x128xf32> to vector<1x128xf32>
    %4 = vector.extract_strided_slice %1 {offsets = [0, 0], sizes = [32, 1], strides = [1, 1]} : vector<32x38xf32> to vector<32x1xf32>
    %5 = vector.extract_strided_slice %1 {offsets = [0, 1], sizes = [32, 1], strides = [1, 1]} : vector<32x38xf32> to vector<32x1xf32>
    %6 = vector.extract_strided_slice %1 {offsets = [0, 2], sizes = [32, 1], strides = [1, 1]} : vector<32x38xf32> to vector<32x1xf32>
    %7 = vector.extract_strided_slice %1 {offsets = [0, 3], sizes = [32, 32], strides = [1, 1]} : vector<32x38xf32> to vector<32x32xf32>
    %8 = vector.extract_strided_slice %1 {offsets = [0, 35], sizes = [32, 1], strides = [1, 1]} : vector<32x38xf32> to vector<32x1xf32>
    %9 = vector.extract_strided_slice %1 {offsets = [0, 36], sizes = [32, 1], strides = [1, 1]} : vector<32x38xf32> to vector<32x1xf32>
    %10 = vector.extract_strided_slice %1 {offsets = [0, 37], sizes = [1, 1], strides = [1, 1]} : vector<32x38xf32> to vector<1x1xf32>
    %11 = vector.broadcast %4 : vector<32x1xf32> to vector<32x128xf32>
    %12 = vector.broadcast %2 : vector<1x128xf32> to vector<32x128xf32>
    %13 = arith.mulf %11, %12 : vector<32x128xf32>
    %14 = vector.broadcast %5 : vector<32x1xf32> to vector<32x128xf32>
    %15 = vector.broadcast %3 : vector<1x128xf32> to vector<32x128xf32>
    %16 = arith.mulf %14, %15 : vector<32x128xf32>
    %17 = arith.addf %13, %16 : vector<32x128xf32>
    %18 = vector.broadcast %6 : vector<32x1xf32> to vector<32x128xf32>
    %19 = arith.addf %17, %18 : vector<32x128xf32>
    %cst = arith.constant 0.000000e+00 : f32
    %20 = vector.broadcast %cst : f32 to vector<32x128xf32>
    %21 = arith.maximumf %19, %20 : vector<32x128xf32>
    %cst_3 = arith.constant dense<0.000000e+00> : vector<32x128xf32>
    %22 = tpu.matmul %7, %21, %cst_3 {dimension_numbers = #tpu.dot_dimension_numbers<[1], [0], [0], [1], [0, 0, 1, 1], [], []>} : vector<32x32xf32>, vector<32x128xf32>, vector<32x128xf32> -> vector<32x128xf32>
    %23 = vector.broadcast %8 : vector<32x1xf32> to vector<32x128xf32>
    %24 = arith.addf %22, %23 : vector<32x128xf32>
    %cst_4 = arith.constant 0.000000e+00 : f32
    %25 = vector.broadcast %cst_4 : f32 to vector<32x128xf32>
    %26 = arith.maximumf %24, %25 : vector<32x128xf32>
    %27 = vector.broadcast %9 : vector<32x1xf32> to vector<32x128xf32>
    %28 = arith.mulf %27, %26 : vector<32x128xf32>
    %cst_5 = arith.constant dense<0.000000e+00> : vector<128xf32>
    %29 = vector.multi_reduction <add>, %28, %cst_5 [0] : vector<32x128xf32> to vector<128xf32>
    %30 = vector.shape_cast %29 : vector<128xf32> to vector<1x128xf32>
    %31 = vector.broadcast %10 : vector<1x1xf32> to vector<1x128xf32>
    %32 = arith.addf %30, %31 : vector<1x128xf32>
    %c0_6 = arith.constant 0 : index
    %c0_7 = arith.constant 0 : index
    %33 = vector.load %arg3[%c0_6, %c0_7] : memref<1x128xf32, #tpu.memory_space<vmem>>, vector<1x128xf32>
    tpu.vector_store %arg3[%c0_6, %c0_7], %32 {strides = array<i32>} : memref<1x128xf32, #tpu.memory_space<vmem>>, vector<1x128xf32>,
    return
  }
  func.func @transform_0(%arg0: i32) -> (i32, i32) {
    %c0_i32 = arith.constant 0 : i32
    %c0_i32_0 = arith.constant 0 : i32
    return %c0_i32, %arg0 : i32, i32
  }
  func.func @transform_1(%arg0: i32) -> (i32, i32) {
    %c0_i32 = arith.constant 0 : i32
    %c0_i32_0 = arith.constant 0 : i32
    %c0_i32_1 = arith.constant 0 : i32
    return %c0_i32, %c0_i32_0 : i32, i32
  }
  func.func @transform_2(%arg0: i32) -> (i32, i32) {
    %c0_i32 = arith.constant 0 : i32
    %c0_i32_0 = arith.constant 0 : i32
    return %c0_i32, %arg0 : i32, i32
  }
}

</mosaic_0001>

<bundles_post_ra>
// kernel: squeeze.5
= control target key start
LH: loop header
LB: loop body
LE: loop exit
PB: predicated region body
PF: predicated region fallthrough
CT: control target
= control target key end

     0   :  { %s80_s0 = inlined_call_operand.vmem [shape: f32[32], index: 0, kind: input, shape index: {}]   ;;  %s81_s1 = inlined_call_operand.hbm [shape: f32[2,16], index: 1, kind: output, shape index: {}]  }
   0x1   :  { %v5_v0 = vld [vmem:[%s80_s0] sm:$0x1] }
   0x2   :  { %2 = vsyncpa [#allocation1], 0  ;;  %6 = vst [vmem:[#allocation3] sm:$0x1] %v5_v0  ;;  %vm8_vm0 = vcmask 130048   ;;  %s62_s0 = smov 112  }
   0x3   :  { %s63_s8 = smov [#allocation0]   ;;  %s27_s1 = sshll.u32 %s81_s1, 4  ;;  %s28_s1 = int_to_ptr.hbm [resolvable:$true] %s27_s1 }
   0x4   :  { %s25_s9 = sshll.u32 %s63_s8, 4  ;;  %s26_s9 = int_to_ptr.vmem [resolvable:$true] %s25_s9 }
   0x9   :  { %v10_v1 = vld [vmem:[#allocation3] sm:$0x1]  }
   0xa   :  { %v7_v2 = vld [vmem:[#allocation3] sm:$0x1]   ;;  %11 = vrot.lane.b32.xlu0 %v10_v1, %s62_s0 }
   0xb   :  { %9 = vst.msk [vmem:[#allocation2] sm:$0x1] %vm8_vm0, %v7_v2  }
  0x7c   :  { %v12_v3 = vpop.permute.xlu0 %11  }
  0x7d   :  { %15 = vst.msk [vmem:[#allocation2 + $0x1] sm:$0x1] %vm8_vm0, %v12_v3  }
  0x84   :  { %v18_v4 = vld [vmem:[#allocation2] sm:$0x3] }
  0x85   :  { %21 = vst [vmem:[#allocation0] sm:$0x3] %v18_v4 }
  0x86   :  { %30 = dma.vmem_to_hbm [thread:$0]  %s26_s9, 32, %s28_s1, [#allocation1]  }
  0x87   :  { %60 = dma.done.wait [#allocation1], 32  }
  0x88   :  { %61 = vsyncadd [#allocation1], 4294967264 }
  0x89   :  { %33 = vsyncpa [#allocation1], 1 }

// kernel: mlp_flux_2_value.1
= control target key start
LH: loop header
LB: loop body
LE: loop exit
PB: predicated region body
PF: predicated region fallthrough
CT: control target
= control target key end

     0   :  { %v236_v0 = vmov 0   ;;  %v237_v4 = vmov 1   ;;  %v238_v6 = vmov 2   ;;  %s239_s17 = smov 125   ;;  %v240_v11 = vmov 35   ;;  %s301_s1 = inlined_call_operand.vmem [shape: f32[32,38], index: 1, kind: input, shape index: {}]   ;;  %s302_s0 = inlined_call_operand.vmem [shape: f32[2,128], index: 0, kind: input, shape index: {}]   ;;  %s303_s2 = inlined_call_operand.vmem [shape: f32[1,128], index: 2, kind: output, shape index: {}]  }
   0x1   :  { %222 = vset.pattern.permute.xlu2 %v236_v0  ;;  %220 = vset.pattern.permute.xlu1 %v236_v0  ;;  %v261_v1 = vld [vmem:[%s301_s1 + $0x18] sm:$0xff]  ;;  %v266_v2 = vld [vmem:[%s301_s1 + $0x10] sm:$0xff]  ;;  %v13_v3 = vld [vmem:[%s301_s1 + $0x8] sm:$0xff]  ;;  %v241_v17 = vmov 36   ;;  %v242_v30 = vmov 37   ;;  %vm114_vm0 = vcmask 261120  }
   0x2   :  { %218 = vset.pattern.permute.xlu0 %v236_v0  ;;  %28 = vperm.xlu1 %220, %v266_v2   ;;  %v278_v5 = vld [vmem:[%s301_s1] sm:$0xff] }
   0x3   :  { %33 = vperm.xlu0 %218, %v261_v1   ;;  %23 = vperm.xlu2 %222, %v13_v3   ;;  %v11_v13 = vld [vmem:[%s302_s0] sm:$0x3] }
   0x4   :  { %v57_v16 = vperm.slane %v11_v13, 1  ;;  %v36_v18 = vperm.slane %v11_v13, 0 }
   0xa   :  { %221 = vset.pattern.permute.xlu1 %v237_v4 }
   0xb   :  { %219 = vset.pattern.permute.xlu0 %v237_v4  ;;  %223 = vset.pattern.permute.xlu2 %v237_v4 }
   0xc   :  { %54 = vperm.xlu0 %219, %v261_v1   ;;  %50 = vperm.xlu1 %221, %v266_v2  }
   0xd   :  { %46 = vperm.xlu2 %223, %v13_v3  }
  0x14   :  { %224 = vset.pattern.permute.xlu1 %v238_v6  ;;  %42 = vperm.xlu0 %219, %v278_v5  }
  0x15   :  { %225 = vset.pattern.permute.xlu2 %v236_v0  ;;  %79 = vperm.xlu1 %224, %v261_v1  }
  0x16   :  { %18 = vperm.xlu2 %225, %v278_v5  }
  0x1c   :  { %227 = vset.pattern.permute.xlu0 %v238_v6 }
  0x1d   :  { %75 = vperm.xlu1 %224, %v266_v2   ;;  %67 = vperm.xlu0 %227, %v278_v5  }
  0x1e   :  { %226 = vset.pattern.permute.xlu2 %v238_v6 }
  0x1f   :  { %71 = vperm.xlu2 %226, %v13_v3  }
  0x25   :  { %110 = vrot.lane.b32.xlu1 %v266_v2, %s239_s17  ;;  %228 = vset.pattern.permute.xlu0 %v240_v11 }
  0x26   :  { %229 = vset.pattern.permute.xlu1 %v240_v11  ;;  %91 = vperm.xlu0 %228, %v278_v5  }
  0x27   :  { %112 = vrot.lane.b32.xlu2 %v261_v1, %s239_s17 }
  0x28   :  { %230 = vset.pattern.permute.xlu2 %v240_v11 }
  0x2d   :  { %106 = vrot.lane.b32.xlu1 %v278_v5, %s239_s17 }
  0x2e   :  { %232 = vset.pattern.permute.xlu0 %v241_v17 }
  0x2f   :  { %108 = vrot.lane.b32.xlu2 %v13_v3, %s239_s17  ;;  %161 = vperm.xlu0 %232, %v13_v3  }
  0x35   :  { %95 = vperm.xlu1 %229, %v13_v3  }
  0x37   :  { %99 = vperm.xlu2 %230, %v266_v2   ;;  %235 = vset.pattern.permute.xlu0 %v242_v30 }
  0x3d   :  { %103 = vperm.xlu1 %229, %v261_v1  }
  0x3f   :  { %231 = vset.pattern.permute.xlu2 %v241_v17 }
  0x40   :  { %157 = vperm.xlu2 %231, %v278_v5  }
  0x45   :  { %233 = vset.pattern.permute.xlu1 %v241_v17 }
  0x46   :  { %165 = vperm.xlu1 %233, %v266_v2  }
  0x48   :  { %169 = vperm.xlu2 %231, %v261_v1  }
  0x4e   :  { %234 = vset.pattern.permute.xlu1 %v242_v30 }
  0x4f   :  { %186 = vperm.xlu1 %234, %v278_v5  }
  0x5d   :  { %v24_v7 = vpop.permute.xlu2 %23 }
  0x5e   :  { %v38_v24 = vmul.f32 %v36_v18, %v24_v7 }
  0x67   :  { %v47_v8 = vpop.permute.xlu2 %46 }
  0x68   :  { %v59_v25 = vmul.f32 %v57_v16, %v47_v8 }
  0x6a   :  { %v63_v31 = vadd.f32 %v59_v25, %v38_v24 }
  0x70   :  { %v19_v12 = vpop.permute.xlu2 %18 }
  0x71   :  { %v37_v32 = vmul.f32 %v36_v18, %v19_v12 }
  0x74   :  { %v29_v9 = vpop.permute.xlu1 %28 }
  0x75   :  { %v34_v10 = vpop.permute.xlu0 %33  ;;  %v39_v33 = vmul.f32 %v36_v18, %v29_v9 }
  0x76   :  { %v40_v20 = vmul.f32 %v36_v18, %v34_v10 }
  0x79   :  { %v72_v21 = vpop.permute.xlu2 %71 }
  0x7a   :  { %v83_v39 = vadd.f32 %v72_v21, %v63_v31 }
  0x7c   :  { %v87_v44 = vmax.f32 %v83_v39, 0.0 }
  0x7e   :  { %v55_v14 = vpop.permute.xlu0 %54  ;;  %v51_v15 = vpop.permute.xlu1 %50 }
  0x7f   :  { %v61_v19 = vmul.f32 %v57_v16, %v55_v14  ;;  %v60_v28 = vmul.f32 %v57_v16, %v51_v15 }
  0x81   :  { %v65_v23 = vadd.f32 %v61_v19, %v40_v20  ;;  %v113_v35 = vpop.permute.xlu2 %112  ;;  %v64_v36 = vadd.f32 %v60_v28, %v39_v33 }
  0x86   :  { %v43_v22 = vpop.permute.xlu0 %42 }
  0x87   :  { %v80_v26 = vpop.permute.xlu1 %79  ;;  %v58_v34 = vmul.f32 %v57_v16, %v43_v22 }
  0x88   :  { %v85_v27 = vadd.f32 %v80_v26, %v65_v23 }
  0x89   :  { %v62_v41 = vadd.f32 %v58_v34, %v37_v32  ;;  %v109_v47 = vpop.permute.xlu2 %108 }
  0x8a   :  { %v89_v29 = vmax.f32 %v85_v27, 0.0 }
  0x8c   :  { %135 = vmatpush.msra.mxu0 %v89_v29  ;;  %199 = vmatpush.msra.mxu1 %v89_v29 }
  0x8d   :  { %200 = vmatpush.msra.mxu2 %v89_v29  ;;  %201 = vmatpush.msra.mxu3 %v89_v29 }
  0x8f   :  { %v76_v37 = vpop.permute.xlu1 %75  ;;  %v68_v38 = vpop.permute.xlu0 %67 }
  0x90   :  { %v84_v40 = vadd.f32 %v76_v37, %v64_v36  ;;  %v82_v43 = vadd.f32 %v68_v38, %v62_v41 }
  0x91   :  { %v100_v50 = vpop.permute.xlu2 %99 }
  0x92   :  { %v88_v42 = vmax.f32 %v84_v40, 0.0  ;;  %v86_v45 = vmax.f32 %v82_v43, 0.0 }
  0x94   :  { %136 = vmatpush.msra.mxu0 %v88_v42  ;;  %202 = vmatpush.msra.mxu1 %v88_v42 }
  0x95   :  { %203 = vmatpush.msra.mxu2 %v88_v42  ;;  %204 = vmatpush.msra.mxu3 %v88_v42 }
  0x96   :  { %137 = vmatpush.msra.mxu0 %v87_v44  ;;  %205 = vmatpush.msra.mxu1 %v87_v44 }
  0x97   :  { %206 = vmatpush.msra.mxu2 %v87_v44  ;;  %207 = vmatpush.msra.mxu3 %v87_v44  ;;  %v111_v46 = vpop.permute.xlu1 %110 }
  0x98   :  { %138 = vmatpush.msra.mxu0 %v86_v45  ;;  %208 = vmatpush.msra.mxu1 %v86_v45  ;;  %v92_v51 = vpop.permute.xlu0 %91 }
  0x99   :  { %209 = vmatpush.msra.mxu2 %v86_v45  ;;  %210 = vmatpush.msra.mxu3 %v86_v45 }
  0x9a   :  { %196 = vmatmul.msk.f32.vlgmr.msra.gmra.mxu1 %vm114_vm0, %v109_v47  ;;  %197 = vmatmul.msk.f32.vlgmr.msra.gmra.mxu2 %vm114_vm0, %v111_v46  ;;  %v158_v55 = vpop.permute.xlu2 %157 }
  0x9b   :  { %198 = vmatmul.msk.f32.vlgmr.msra.gmra.mxu3 %vm114_vm0, %v113_v35 }
  0x9f   :  { %v107_v48 = vpop.permute.xlu1 %106 }
  0xa0   :  { %195 = vmatmul.msk.f32.vlgmr.msra.gmra.mxu0 %vm114_vm0, %v107_v48 }
  0xa1   :  { %v162_v62 = vpop.permute.xlu0 %161 }
  0xa2   :  { %v170_v8 = vpop.permute.xlu2 %169 }
  0xa7   :  { %v96_v49 = vpop.permute.xlu1 %95 }
  0xaf   :  { %v104_v53 = vpop.permute.xlu1 %103 }
  0xb8   :  { %v166_v2 = vpop.permute.xlu1 %165 }
  0xc1   :  { %v187_v17 = vpop.permute.xlu1 %186 }
 0x117   :  { %v143_v52 = vpop.f32.mrf.mxu1 }
 0x118   :  { %v144_v54 = vadd.f32 %v143_v52, %v96_v49 }
 0x11a   :  { %v153_v58 = vmax.f32 %v144_v54, 0.0 }
 0x11c   :  { %v173_v3 = vmul.f32 %v162_v62, %v153_v58 }
 0x11d   :  { %v146_v56 = vpop.f32.mrf.mxu2  ;;  %v140_v57 = vpop.f32.mrf.mxu0 }
 0x11e   :  { %v147_v59 = vadd.f32 %v146_v56, %v100_v50  ;;  %v149_v60 = vpop.f32.mrf.mxu3  ;;  %v141_v61 = vadd.f32 %v140_v57, %v92_v51 }
 0x11f   :  { %v150_v63 = vadd.f32 %v149_v60, %v104_v53 }
 0x120   :  { %v154_v0 = vmax.f32 %v147_v59, 0.0  ;;  %v152_v1 = vmax.f32 %v141_v61, 0.0 }
 0x121   :  { %v155_v4 = vmax.f32 %v150_v63, 0.0 }
 0x122   :  { %v172_v5 = vmul.f32 %v158_v55, %v152_v1  ;;  %v174_v6 = vmul.f32 %v166_v2, %v154_v0 }
 0x123   :  { %v175_v9 = vmul.f32 %v170_v8, %v155_v4 }
 0x124   :  { %v176_v7 = vadd.f32 %v173_v3, %v172_v5 }
 0x126   :  { %v177_v10 = vadd.f32 %v176_v7, %v174_v6 }
 0x128   :  { %v178_v11 = vadd.f32 %v177_v10, %v175_v9 }
 0x12a   :  { %v179_v12 = vrot.slane %v178_v11, 4 }
 0x12c   :  { %v180_v13 = vadd.f32 %v179_v12, %v178_v11 }
 0x12e   :  { %v181_v14 = vrot.slane %v180_v13, 2 }
 0x130   :  { %v182_v15 = vadd.f32 %v181_v14, %v180_v13 }
 0x132   :  { %v183_v16 = vrot.slane %v182_v15, 1 }
 0x134   :  { %v184_v18 = vadd.f32 %v183_v16, %v182_v15 }
 0x136   :  { %v189_v19 = vadd.f32 %v187_v17, %v184_v18 }
 0x138   :  { %190 = vst [vmem:[%s303_s2] sm:$0x1] %v189_v19 }

</bundles_post_ra>
